<compile_context>
chip_gen: v7x
topology: tpu7x:2x2x1
jax: 0.10.0
libtpu: 0.0.40
codegen_flags: <defaults>
</compile_context>

<pallas_src>
import functools

import jax
import jax.numpy as jnp
from jax.experimental import pallas as pl
from jax.experimental.pallas import tpu as pltpu


def _cosface_kernel(cos_ref, lab_ref, out_ref, *, s, m, tile_c):
    # cos_ref: (TB, TC) tile of the cosine matrix (input dtype, f32 or bf16)
    # lab_ref: (TB, 1) int32 tile of labels (-1 == "no label")
    # out_ref: (TB, TC) tile of the output (same dtype as input)
    lab = lab_ref[...]                                               # (TB, 1)
    # Global class index = class-tile offset + local lane iota.
    col = (pl.program_id(1) * tile_c
           + jax.lax.broadcasted_iota(jnp.int32, cos_ref.shape, 1))  # (TB, TC)
    hit = (col == lab) & (lab != -1)                                 # (TB, TC)
    x = cos_ref[...]                               # native dtype (bf16 stays bf16)
    dt = x.dtype
    margin = jnp.where(hit, jnp.asarray(m, dt), jnp.asarray(0, dt))
    out_ref[...] = (x - margin) * jnp.asarray(s, dt)


def _gen_params():
    """Generation-aware (target_block_bytes, vmem_limit_bytes)."""
    try:
        vmem_phys = int(getattr(pltpu.get_tpu_info(), "vmem_capacity_bytes", 0))
    except Exception:  # detection failure -> conservative (v7x-safe) defaults
        vmem_phys = 0
    if vmem_phys >= (96 << 20):          # v5e / v6e: 128 MiB physical VMEM
        return 8 << 20, 64 << 20
    return 6 << 20, 48 << 20             # v7x (64 MiB physical) or unknown


def _choose_tiles(B, C, dtype, target_block_bytes, min_row_steps=4):
    """Pick (tile_b, tile_c): lane-dense blocks as big as the VMEM budget
    allows (double-buffered in+out = 4x block must fit), sublane-aligned rows,
    and >= min_row_steps row tiles when B allows (keeps both v7x TCs busy)."""
    itemsize = jnp.dtype(dtype).itemsize
    sub = 16 if itemsize == 2 else 8             # sublane packing per dtype
    min_rows = B if B <= sub else sub

    full_row_bytes = max(1, C * itemsize)
    if min_rows * full_row_bytes <= target_block_bytes:
        tile_c = C                               # full class width, lane-dense
    else:
        # Huge class counts: tile the class dim in multiples of 128 lanes.
        tile_c = (target_block_bytes // (min_rows * itemsize)) // 128 * 128
        tile_c = max(128, min(tile_c, max(128, (C // 128) * 128)))

    tb = max(1, target_block_bytes // (tile_c * itemsize))
    tb = min(tb, B)
    if B <= sub:
        tb = B                                   # full-dim row block (legal)
    else:
        steps = min(min_row_steps, max(1, B // sub))
        cap = -(-B // steps)                     # ceil(B / steps)
        cap = -(-cap // sub) * sub               # round up to sublane multiple
        tb = min(tb, cap)
        tb = max(sub, (tb // sub) * sub)         # sublane-align (>= sub)
    return tb, tile_c


def cosface_forward(cosine, label, *, s=64.0, m=0.4, tile_b=None, tile_c=None,
                    donate_cosine=False):
    """cosine: (B, C) float32/bfloat16, label: (B,) int32 (-1 = no label).

    donate_cosine=True reuses the cosine HBM slab for the output (in-place,
    like the PyTorch module). Pair it with jax.jit donate_argnums, otherwise
    XLA inserts a defensive copy and the alias silently disappears.
    """
    B, C = cosine.shape
    dtype = cosine.dtype
    target_block_bytes, vmem_limit = _gen_params()
    tb, tc = _choose_tiles(B, C, dtype, target_block_bytes)
    if tile_b is not None:
        tb = tile_b
    if tile_c is not None:
        tc = tile_c
    label2d = label.reshape(B, 1).astype(jnp.int32)

    kernel = functools.partial(_cosface_kernel, s=float(s), m=float(m), tile_c=tc)

    return pl.pallas_call(
        kernel,
        out_shape=jax.ShapeDtypeStruct((B, C), dtype),
        grid_spec=pltpu.PrefetchScalarGridSpec(
            num_scalar_prefetch=0,
            grid=(pl.cdiv(B, tb), pl.cdiv(C, tc)),        # (row tiles, class tiles)
            in_specs=[
                pl.BlockSpec((tb, tc), lambda i, j: (i, j)),
                pl.BlockSpec((tb, 1), lambda i, j: (i, 0)),
            ],
            out_specs=pl.BlockSpec((tb, tc), lambda i, j: (i, j)),
        ),
        compiler_params=pltpu.CompilerParams(
            dimension_semantics=("parallel", "parallel"),  # pure elementwise
            vmem_limit_bytes=vmem_limit),
        input_output_aliases={0: 0} if donate_cosine else {},
    )(cosine, label2d)


def _reference(cosine, label, s=64.0, m=0.4):
    B, C = cosine.shape
    col = jnp.arange(C)[None, :]
    hit = (col == label[:, None]) & (label[:, None] != -1)
    return (cosine.astype(jnp.float32) - jnp.where(hit, m, 0.0)) * s


if __name__ == "__main__":
    # CosFace has no learnable parameters; s and m are fixed hyperparameters.
    s, m = 64.0, 0.4
    B, C = 16, 256  # batch of cosines x number of classes

    key = jax.random.PRNGKey(0)
    k1, k2, k3 = jax.random.split(key, 3)
    cosine = jax.random.uniform(k1, (B, C), jnp.float32, minval=-1.0, maxval=1.0)
    label = jax.random.randint(k2, (B,), 0, C, dtype=jnp.int32)
    # Mark some rows as "no label" (-1), as the PyTorch forward handles.
    drop = jax.random.bernoulli(k3, 0.25, (B,))
    label = jnp.where(drop, -1, label)

    ref = _reference(cosine, label, s=s, m=m)

    # 1) f32, auto-tiled (full class width) -- bit-faithful to the PyTorch module.
    out = jax.block_until_ready(cosface_forward(cosine, label, s=s, m=m))
    assert jnp.allclose(out, ref, atol=1e-5, rtol=1e-5), "f32 mismatch vs reference"

    # 2) f32, forced class-tiled 2-D grid path (exercises the global-iota offset).
    out_ct = jax.block_until_ready(
        cosface_forward(cosine, label, s=s, m=m, tile_b=8, tile_c=128))
    assert jnp.allclose(out_ct, ref, atol=1e-5, rtol=1e-5), "C-tiled mismatch"

    # 3) bf16 I/O with native bf16 compute -- halves HBM traffic and VALU work.
    cos_bf16 = cosine.astype(jnp.bfloat16)
    out_bf16 = jax.block_until_ready(cosface_forward(cos_bf16, label, s=s, m=m))
    assert out_bf16.dtype == jnp.bfloat16
    ref_bf16 = _reference(cos_bf16.astype(jnp.float32), label, s=s, m=m)
    assert jnp.allclose(out_bf16.astype(jnp.float32), ref_bf16,
                        atol=0.5, rtol=2e-2), "bf16 mismatch vs reference"

    # 4) small batch (B < 8): full-dim row block (fixes old illegal-tile corner).
    Bs = 4
    cos_s = cosine[:Bs]
    lab_s = label[:Bs]
    out_s = jax.block_until_ready(cosface_forward(cos_s, lab_s, s=s, m=m))
    assert jnp.allclose(out_s, _reference(cos_s, lab_s, s=s, m=m),
                        atol=1e-5, rtol=1e-5), "small-batch mismatch"

    print("KERNEL_OK")
</pallas_src>

<mosaic_0001>
module attributes {stable_mosaic.version = 11 : i64} {
  func.func @_cosface_kernel(%arg0: i32, %arg1: i32, %arg2: memref<8x256xf32, #tpu.memory_space<vmem>>, %arg3: memref<8x1xi32, #tpu.memory_space<vmem>>, %arg4: memref<8x256xf32, #tpu.memory_space<vmem>>) attributes {dimension_semantics = [#tpu.dimension_semantics<parallel>, #tpu.dimension_semantics<parallel>], iteration_bounds = array<i64: 2, 1>, scalar_prefetch = 0 : i64, scratch_operands = 0 : i64, tpu.core_type = #tpu.core_type<tc>, window_params = [{transform_indices = @transform_0, window_bounds = array<i64: 8, 256>}, {transform_indices = @transform_1, window_bounds = array<i64: 8, 1>}, {transform_indices = @transform_2, window_bounds = array<i64: 8, 256>}]} {
    %c0 = arith.constant 0 : index
    %c0_0 = arith.constant 0 : index
    %0 = vector.load %arg3[%c0, %c0_0] : memref<8x1xi32, #tpu.memory_space<vmem>>, vector<8x1xi32>
    %c256_i32 = arith.constant 256 : i32
    %1 = arith.muli %arg1, %c256_i32 : i32
    %2 = tpu.iota {dimensions = array<i32: 1>} : vector<8x256xi32>
    %3 = vector.broadcast %1 : i32 to vector<8x256xi32>
    %4 = arith.addi %3, %2 : vector<8x256xi32>
    %5 = vector.broadcast %0 : vector<8x1xi32> to vector<8x256xi32>
    %6 = arith.cmpi eq, %4, %5 : vector<8x256xi32>
    %c-1_i32 = arith.constant -1 : i32
    %7 = vector.broadcast %c-1_i32 : i32 to vector<8x1xi32>
    %8 = arith.cmpi ne, %0, %7 : vector<8x1xi32>
    %9 = vector.broadcast %8 : vector<8x1xi1> to vector<8x256xi1>
    %10 = arith.andi %6, %9 : vector<8x256xi1>
    %c0_1 = arith.constant 0 : index
    %c0_2 = arith.constant 0 : index
    %11 = vector.load %arg2[%c0_1, %c0_2] : memref<8x256xf32, #tpu.memory_space<vmem>>, vector<8x256xf32>
    %cst = arith.constant 4.000000e-01 : f32
    %cst_3 = arith.constant 0.000000e+00 : f32
    %12 = vector.broadcast %cst : f32 to vector<8x256xf32>
    %13 = vector.broadcast %cst_3 : f32 to vector<8x256xf32>
    %14 = arith.select %10, %12, %13 : vector<8x256xi1>, vector<8x256xf32>
    %15 = arith.subf %11, %14 : vector<8x256xf32>
    %cst_4 = arith.constant 6.400000e+01 : f32
    %16 = vector.broadcast %cst_4 : f32 to vector<8x256xf32>
    %17 = arith.mulf %15, %16 : vector<8x256xf32>
    %c0_5 = arith.constant 0 : index
    %c0_6 = arith.constant 0 : index
    %18 = vector.load %arg4[%c0_5, %c0_6] : memref<8x256xf32, #tpu.memory_space<vmem>>, vector<8x256xf32>
    tpu.vector_store %arg4[%c0_5, %c0_6], %17 {strides = array<i32>} : memref<8x256xf32, #tpu.memory_space<vmem>>, vector<8x256xf32>,
    return
  }
  func.func @transform_0(%arg0: i32, %arg1: i32) -> (i32, i32) {
    %c0_i32 = arith.constant 0 : i32
    return %arg0, %arg1 : i32, i32
  }
  func.func @transform_1(%arg0: i32, %arg1: i32) -> (i32, i32) {
    %c0_i32 = arith.constant 0 : i32
    %c0_i32_0 = arith.constant 0 : i32
    return %arg0, %c0_i32 : i32, i32
  }
  func.func @transform_2(%arg0: i32, %arg1: i32) -> (i32, i32) {
    %c0_i32 = arith.constant 0 : i32
    return %arg0, %arg1 : i32, i32
  }
}

</mosaic_0001>

<bundles_post_ra>
// kernel: tpu_custom_call.1
= control target key start
LH: loop header
LB: loop body
LE: loop exit
PB: predicated region body
PF: predicated region fallthrough
CT: control target
= control target key end

     0   :  { %7 = vsyncpa [#allocation3], 0  ;;  %s738_s0 = inlined_call_operand.hbm [shape: f32[16,256], index: 0, kind: input, shape index: {}]   ;;  %s739_s1 = inlined_call_operand.vmem [shape: s32[16,1], index: 1, kind: input, shape index: {}]   ;;  %s740_s2 = inlined_call_operand.hbm [shape: f32[16,256], index: 2, kind: output, shape index: {}]  }
   0x1   :  { %9 = vsyncpa [#allocation3 + $0x1], 0 }
   0x2   :  { %10 = vsyncpa [#allocation4], 0 }
   0x3   :  { %12 = vsyncpa [#allocation4 + $0x1], 0  ;;  %s557_s9 = smov 0   ;;  %s559_s10 = smov 0  }
   0x4   :  { %s561_s11 = smov 0   ;;  %s563_s12 = smov 0  }
   0x5   :  { %s565_s13 = smov 0   ;;  %s567_s14 = smov 0  }
   0x6 LB: > { %s341_s15 = sadd.s32 4294967295, %s536_s14   ;;  %s342_s16 = sadd.s32 4294967294, %s536_s14   ;;  %s536_s14 = sphi %s567_s14, %s18_s14   ;;  %s532_s13 = sphi %s565_s13, %s756_s13   ;;  %s528_s12 = sphi %s563_s12, %s755_s12   ;;  %s524_s11 = sphi %s561_s11, %s754_s11   ;;  %s520_s10 = sphi %s559_s10, %s753_s10   ;;  %s516_s9 = sphi %s557_s9, %s752_s9  }
   0x7   : > { %s30_s17 = sadd.s32 1, %s532_s13  ;;  %s39_s18 = sadd.s32 1, %s524_s11 }
   0x8   : > { %p32_p0 = scmp.ge.s32.totalorder %s30_s17, 2  ;;  %p46_p1 = scmp.ne.s32.totalorder %s524_s11, %s520_s10 }
   0x9   : > { %p47_p2 = scmp.eq.s32.totalorder %s536_s14, 0  ;;  %p52_p3 = scmp.ne.s32.totalorder %s520_s10, %s516_s9 }
   0xa   : > { %s758_s17 = smov (%p32_p0, %s30_s17), 0  ;;  %p53_p5 = scmp.eq.s32.totalorder %s341_s15, 0 }
   0xb   : > { %p598_p4 = por %p47_p2, %p46_p1  ;;  %s34_s20 = ssub.s32 %s532_s13, %s758_s17 }
   0xc   : > { %p104_p6 = scmp.eq.s32.totalorder %s341_s15, 1  ;;  %p37_p7 = scmp.eq.s32.totalorder %s34_s20, 0 }
   0xd   : > { %p604_p8 = por %p53_p5, %p52_p3  ;;  %p110_p10 = scmp.eq.s32.totalorder %s342_s16, 1 }
   0xe   : > { %p608_p9 = por %p104_p6, %p46_p1  ;;  %p371_p13 = scmp.lt.s32.totalorder %s536_s14, 2 }
   0xf   : > { %s613_s23 = scalar_select %p37_p7, %s524_s11, %s39_s18  }
  0x10   : > { %s744_s22 = scalar_select %p608_p9, 1, 0 }
  0x11   : > { %p615_p11 = por %p110_p10, %p52_p3  ;;  %s130_s25 = sand.u32 1, %s524_s11  }
  0x12   : > { %s345_s26 = sshll.u32 %s130_s25, 4  ;;  %s357_s27 = sshll.u32 %s532_s13, 8 }
  0x13   : > { %s745_s24 = scalar_select %p615_p11, 1, 0 }
  0x14   : > { %s626_s30 = scalar_lea.hbm %s738_s0, %s357_s27  ;;  %s134_s3 = scalar_lea.vmem [#allocation2], %s345_s26 }
  0x15   : > { %s144_s4 = sshll.u32 %s134_s3, 4  ;;  %p632_p0 = pnand %p371_p13, %p598_p4  ;;  %s628_s4 = int_to_ptr.vmem [resolvable:$true] %s144_s4 }
  0x16   : > { %s131_s6 = scalar_lea.sflag [#allocation3], %s130_s25  ;;  %s424_s7 = scalar_lea.hbm %s626_s30, 256 }
  0x17   : > { %p425_p3 = scmp.ne.s32.totalorder %s626_s30, %s424_s7  ;;  %p426_p5 = pneg %p632_p0 }
  0x18   : > { %s429_s16 = scalar_lea.hbm %s738_s0, 512  ;;  %p430_p4 = scmp.lt.u32.totalorder %s626_s30, %s738_s0 }
  0x19   : > { %p427_p6 = pnand %p426_p5, %p425_p3  ;;  %p431_p10 = scmp.lt.u32.totalorder %s429_s16, %s424_s7 }
  0x1a   : > { %p433_p12 = scmp.lt.u32.totalorder %s424_s7, %s626_s30 }
  0x1b   : > { %p428_p7 = pneg %p427_p6  ;;  %p432_p13 = por %p431_p10, %p430_p4 }
  0x1d   : > { %p434_p1 = por %p433_p12, %p432_p13 }
  0x1f   : > { %p435_p2 = pnand %p434_p1, %p428_p7 }
  0x21   : > { %438 = shalt.err (!%p435_p2)
}
  0x22   : > { %s439_s20 = scalar_lea.vmem %s628_s4, 256  ;;  %s538_s25 = smov [#allocation2]  }
  0x23   : > { %p440_p3 = scmp.ne.s32.totalorder %s628_s4, %s439_s20  ;;  %s444_s26 = sshll.u32 %s538_s25, 4  ;;  %s445_s26 = int_to_ptr.vmem [resolvable:$false] %s444_s26 }
  0x24   : > { %s446_s27 = scalar_lea.vmem %s445_s26, 512  ;;  %p447_p9 = scmp.lt.s32.totalorder %s628_s4, %s445_s26 }
  0x25   : > { %p442_p6 = pnand %p440_p3, %p426_p5  ;;  %p448_p4 = scmp.lt.s32.totalorder %s446_s27, %s439_s20 }
  0x27   : > { %p443_p11 = pneg %p442_p6  ;;  %p449_p10 = por %p448_p4, %p447_p9 }
  0x29   : > { %p450_p12 = pnand %p449_p10, %p443_p11 }
  0x2b   : > { %453 = shalt.err (!%p450_p12)
}
  0x2c   : > { %366 = dma.hbm_to_vmem [thread:$0]  (!%p632_p0), %s626_s30, 256, %s628_s4, %s131_s6  }
  0x2d   : > { %p747_p1 = scmp.lt.s32.totalorder %s536_s14, 3  ;;  %p748_p2 = scmp.ge.s32.totalorder %s536_s14, 1 }
  0x2f   : > { %p157_p5 = pnand %p748_p2, %p747_p1 }
  0x30   : > { %s668_s28 = sand.u32 (!%p157_p5), 1, %s520_s10  }
  0x31   : > { %160 = sbr.rel (%p157_p5) target bundleno = 218 (0xda), region = 28  ;;  %s349_s29 = sshll.u32 (!%p157_p5), %s668_s28, 4 }
  0x32   : > { %s163_s3 = scalar_lea.sflag (!%p157_p5), [#allocation3], %s668_s28  ;;  %s166_s5 = scalar_lea.vmem (!%p157_p5), [#allocation2], %s349_s29 }
  0x38   : > { %507 = dma.done.wait (%p604_p8), %s163_s3, 256  }
  0x39   : > { %509 = vsyncadd (%p604_p8), %s163_s3, 4294967040  ;;  %p192_p9 = scmp.lt.s32.totalorder %s528_s12, 1  ;;  %v539_v0 = vmov 0   ;;  %v199_v3 = vlaneseq  ;;  %v218_v8 = vld [vmem:[%s166_s5] sm:$0xff]  ;;  %v219_v9 = vld [vmem:[%s166_s5 + $0x8] sm:$0xff]  ;;  %v540_v10 = vmov 0.0  }
  0x3a   : > { %423 = vset.pattern.permute.xlu0 %v539_v0  ;;  %s358_s21 = sshll.u32 %s528_s12, 8  ;;  %s190_s15 = scalar_lea.vmem [#allocation5], %s349_s29 }
  0x3b   : > { %s193_s30 = scalar_select %p192_p9, %s528_s12, 1  ;;  %v200_v4 = vand.u32 127, %v199_v3 }
  0x3c   : > { %s245_s16 = sshll.u32 %s190_s15, 4  ;;  %s689_s20 = scalar_lea.hbm %s740_s2, %s358_s21  ;;  %s691_s16 = int_to_ptr.vmem [resolvable:$true] %s245_s16 }
  0x3d   : > { %s351_s4 = sshll.u32 %s193_s30, 3  ;;  %v201_v6 = vadd.s32 128, %v200_v4  ;;  %s229_s25 = scalar_lea.sflag [#allocation4], %s668_s28 }
  0x3e   : > { %s195_s8 = scalar_lea.vmem %s739_s1, %s351_s4  ;;  %s454_s12 = scalar_lea.vmem %s691_s16, 256 }
  0x3f   : > { %v197_v1 = vld [vmem:[%s195_s8] sm:$0xff]  ;;  %p455_p8 = scmp.ne.s32.totalorder %s691_s16, %s454_s12  ;;  %p749_p11 = scmp.ne.s32.totalorder %s744_s22, 0 }
  0x40   : > { %206 = vperm.xlu0 %423, %v197_v1   ;;  %vm210_vm0 = vcmp.ne.s32.totalorder %v197_v1, 4294967295  ;;  %s541_s26 = smov [#allocation5]  }
  0x41   : > { %v211_v2 = vsel %vm210_vm0, 1, %v539_v0  ;;  %p456_p0 = pnand %p455_p8, %p749_p11  ;;  %s458_s27 = sshll.u32 %s541_s26, 4  ;;  %s459_s27 = int_to_ptr.vmem [resolvable:$false] %s458_s27 }
  0x42   : > { %s460_s29 = scalar_lea.vmem %s459_s27, 512  ;;  %p461_p13 = scmp.lt.s32.totalorder %s691_s16, %s459_s27 }
  0x43   : > { %p457_p7 = pneg %p456_p0  ;;  %p462_p3 = scmp.lt.s32.totalorder %s460_s29, %s454_s12 }
  0x44   : > { %213 = vperm.xlu0 %423, %v211_v2  }
  0x45   : > { %p463_p6 = por %p462_p3, %p461_p13 }
  0x47   : > { %p464_p4 = pnand %p463_p6, %p457_p7 }
  0xbf   : > { %v207_v5 = vpop.permute.xlu0 %206 }
  0xc0   : > { %vm208_vm1 = vcmp.eq.s32.totalorder %v200_v4, %v207_v5  ;;  %vm209_vm3 = vcmp.eq.s32.totalorder %v201_v6, %v207_v5 }
  0xc3   : > { %v214_v7 = vpop.permute.xlu0 %213 }
  0xc4   : > { %vm215_vm2 = vcmp.eq.s32.totalorder %v214_v7, 1 }
  0xc5   : > { %vm216_vm4 = vmand %vm208_vm1, %vm215_vm2 }
  0xc6   : > { %vm217_vm5 = vmand %vm209_vm3, %vm215_vm2  ;;  %v220_v11 = vsel %vm216_vm4, 0.4, %v540_v10 }
  0xc7   : > { %v221_v12 = vsel %vm217_vm5, 0.4, %v540_v10  ;;  %v222_v13 = vsub.f32 %v218_v8, %v220_v11 }
  0xc8   : > { %v223_v14 = vsub.f32 %v219_v9, %v221_v12 }
  0xc9   : > { %v224_v15 = vmul.f32 64.0, %v222_v13 }
  0xca   : > { %v225_v16 = vmul.f32 64.0, %v223_v14 }
  0xcb   : > { %226 = vst [vmem:[%s190_s15] sm:$0xff] %v224_v15 }
  0xcc   : > { %227 = vst [vmem:[%s190_s15 + $0x8] sm:$0xff] %v225_v16 }
  0xcd   : > { %467 = shalt.err (!%p464_p4)
}
  0xce   : > { %s468_s28 = scalar_lea.hbm %s689_s20, 256  ;;  %s472_s30 = scalar_lea.hbm %s740_s2, 512 }
  0xcf   : > { %p469_p10 = scmp.ne.s32.totalorder %s689_s20, %s468_s28  ;;  %p473_p2 = scmp.lt.u32.totalorder %s689_s20, %s740_s2 }
  0xd0   : > { %p474_p5 = scmp.lt.u32.totalorder %s472_s30, %s468_s28  ;;  %p476_p8 = scmp.lt.u32.totalorder %s468_s28, %s689_s20 }
  0xd1   : > { %p470_p12 = pnand %p469_p10, %p749_p11 }
  0xd2   : > { %p475_p9 = por %p474_p5, %p473_p2 }
  0xd3   : > { %p471_p1 = pneg %p470_p12 }
  0xd4   : > { %p477_p0 = por %p476_p8, %p475_p9 }
  0xd6   : > { %p478_p7 = pnand %p477_p0, %p471_p1 }
  0xd8   : > { %481 = shalt.err (!%p478_p7)
}
  0xd9   : > { %361 = dma.vmem_to_hbm [thread:$0]  (%p749_p11), %s691_s16, 256, %s689_s20, %s229_s25  }
  0xda PF: > { %s257_s7 = sand.u32 1, %s516_s9   ;;  %p750_p13 = scmp.ne.s32.totalorder %s745_s24, 0 }
  0xdb   : > { %p751_p3 = scmp.ge.s32.totalorder %s536_s14, 2  ;;  %s258_s8 = scalar_lea.sflag [#allocation4], %s257_s7 }
  0xdd   : > { %p368_p6 = pnand %p751_p3, %p750_p13 }
  0xdf   : > { %511 = dma.done.wait (!%p368_p6), %s258_s8, 256  }
  0xe0   : > { %513 = vsyncadd (!%p368_p6), %s258_s8, 4294967040  ;;  %s18_s14 = sadd.s32 1, %s536_s14   ;;  %s752_s9 = smov %s520_s10 }
  0xe1   : > { %p15_p4 = scmp.ge.s32.totalorder %s18_s14, 4   ;;  %s753_s10 = smov %s524_s11 }
  0xe2   : > { %s754_s11 = smov %s613_s23  ;;  %s755_s12 = smov %s532_s13 }
  0xe3   : > { %s756_s13 = smov %s758_s17  ;;  %17 = sbr.rel (!%p15_p4) target bundleno = 6 (0x6), region = 76 }
  0xea   :  { %263 = vsyncpa [#allocation3], 1 }
  0xeb   :  { %265 = vsyncpa [#allocation3 + $0x1], 1 }
  0xec   :  { %266 = vsyncpa [#allocation4], 1 }
  0xed   :  { %268 = vsyncpa [#allocation4 + $0x1], 1 }

</bundles_post_ra>
